<compile_context>
chip_gen: v6e
topology: v6e:2x2x1
jax: 0.10.0
libtpu: 0.0.40
codegen_flags: <defaults>
</compile_context>

<pallas_src>
import numpy as np
import jax
import jax.numpy as jnp
from jax import lax
from jax.experimental import pallas as pl
from jax.experimental.pallas import tpu as pltpu

# ---- shape constants (conv1 + Flatten yields exactly 170 features) ----
N = 2                  # batch
H, W = 128, 17         # spatial dims of the NCHW input (C = 1)
KH = 17                # conv kernel height (kernel width is 1)
STRIDE_H = 7
DIL_H = 4
H_OUT = (H - DIL_H * (KH - 1) - 1) // STRIDE_H + 1   # = 10
FEAT = H_OUT * W                                      # = 170
HID = 40
OUT = 2

NP = 8                 # batch padded to a full sublane group
OUTP = 128             # output lanes padded to a full lane tile


def tiny_model_kernel(x_ref, t_ref, cb_ref, w1_ref, b1_ref, w2_ref, b2_ref, o_ref):
    # x_ref:  (W*NP, H) = (136, 128)  rows ordered (w, n); contraction dim K = H = 128
    # t_ref:  (H, H_OUT) = (128, 10)  H-only Toeplitz of the dilated/strided conv
    # cb_ref: (1,) in SMEM            scalar conv bias
    # w1_ref: (W, H_OUT, HID)         Linear1 weight, rearranged host-side
    # b1_ref: (1, HID)
    # w2_ref: (HID, OUTP)             Linear2 weight transposed, zero-padded to 128 cols
    # b2_ref: (1, OUTP)
    # o_ref:  (NP, OUTP)
    cb = cb_ref[0]

    # Conv2d(1,1,(17,1),stride=(7,1),dilation=4) + bias as ONE GEMM over H, then ReLU.
    c = jnp.dot(x_ref[...], t_ref[...], preferred_element_type=jnp.float32) + cb
    c = jnp.maximum(c, 0.0)                              # (136, 10); rows are (w, n)

    # Dropout(p=0.29) -> identity (inference semantics).
    # Linear1: contract over (w, h_out) as 17 sublane-aligned block GEMMs (static unroll).
    acc = jnp.dot(c[0:NP, :], w1_ref[0], preferred_element_type=jnp.float32)
    for w in range(1, W):
        acc = acc + jnp.dot(c[w * NP:(w + 1) * NP, :], w1_ref[w],
                            preferred_element_type=jnp.float32)
    h1 = jnp.maximum(acc + b1_ref[...], 0.0)             # (NP, HID)

    # Dropout(p=0.23) -> identity (inference semantics).
    # Linear2 with lane-dense (NP, OUTP) output -> unmasked stores.
    o_ref[...] = jnp.dot(h1, w2_ref[...], preferred_element_type=jnp.float32) + b2_ref[...]


def build_conv_toeplitz(conv_w_1d):
    """H-only Toeplitz T (H, H_OUT): (x[n, :, w] @ T)[o] == conv output at (n, o, w)."""
    rows = np.arange(H)[:, None]                   # candidate input row h
    cols = np.arange(H_OUT)[None, :]               # output row o
    k_num = rows - STRIDE_H * cols                 # h - 7*o must equal 4*k
    valid = (k_num >= 0) & (k_num % DIL_H == 0) & (k_num // DIL_H < KH)
    k_safe = np.where(valid, np.maximum(k_num, 0) // DIL_H, 0)
    return jnp.where(jnp.asarray(valid), conv_w_1d[k_safe], 0.0).astype(jnp.float32)


@jax.jit
def tiny_model_forward(x, conv_w, conv_b, w1, b1, w2, b2):
    # Host-side layout plumbing only (no compute hoisted out of the kernel besides
    # static weight rearrangement, which is a one-time cost).
    t_mat = build_conv_toeplitz(conv_w.reshape(KH))             # (128, 10)

    # NCHW -> (W, N, H) -> pad batch to NP -> (W*NP, H) so K = 128 exactly.
    x_wnh = jnp.transpose(x[:, 0, :, :], (2, 0, 1))             # (W, N, H)
    x_wnh = jnp.pad(x_wnh, ((0, 0), (0, NP - N), (0, 0)))       # (W, NP, H)
    x_gemm = x_wnh.reshape(W * NP, H)                           # (136, 128)

    # PyTorch flatten order is f = h_out*W + w, so w1_3d[w, h_out, j] = w1[j, h_out*W + w].
    w1_3d = jnp.transpose(w1.reshape(HID, H_OUT, W), (2, 1, 0))  # (W, H_OUT, HID)
    w2_pad = jnp.zeros((HID, OUTP), jnp.float32).at[:, :OUT].set(w2.T)
    b2_pad = jnp.zeros((1, OUTP), jnp.float32).at[0, :OUT].set(b2)

    vmem = pl.BlockSpec(memory_space=pltpu.MemorySpace.VMEM)
    smem = pl.BlockSpec(memory_space=pltpu.MemorySpace.SMEM)
    out_pad = pl.pallas_call(
        tiny_model_kernel,
        out_shape=jax.ShapeDtypeStruct((NP, OUTP), jnp.float32),
        in_specs=[vmem, vmem, smem, vmem, vmem, vmem, vmem],
        out_specs=vmem,
    )(
        x_gemm,                     # (136, 128)
        t_mat,                      # (128, 10)   ~5 KB
        conv_b,                     # (1,) scalar bias in SMEM
        w1_3d,                      # (17, 10, 40)
        b1.reshape(1, HID),         # (1, 40)
        w2_pad,                     # (40, 128)
        b2_pad,                     # (1, 128)
    )
    return out_pad[:N, :OUT]


def reference_forward(x, conv_w, conv_b, w1, b1, w2, b2):
    """Pure-JAX reference matching PyTorch eval-mode semantics."""
    conv = lax.conv_general_dilated(
        x, conv_w, window_strides=(STRIDE_H, 1), padding="VALID",
        rhs_dilation=(DIL_H, DIL_H), dimension_numbers=("NCHW", "OIHW", "NCHW"))
    conv = jnp.maximum(conv + conv_b.reshape(1, 1, 1, 1), 0.0)
    feat = conv.reshape(N, FEAT)
    h1 = jnp.maximum(feat @ w1.T + b1, 0.0)
    return h1 @ w2.T + b2


if __name__ == "__main__":
    key = jax.random.PRNGKey(0)
    kx, kcw, kcb, kw1, kb1, kw2, kb2 = jax.random.split(key, 7)

    x = jax.random.normal(kx, (N, 1, H, W), jnp.float32)

    # Deterministic PyTorch-style uniform(-1/sqrt(fan_in), 1/sqrt(fan_in)) init.
    bc = 1.0 / np.sqrt(KH)
    conv_w = jax.random.uniform(kcw, (1, 1, KH, 1), jnp.float32, -bc, bc)
    conv_b = jax.random.uniform(kcb, (1,), jnp.float32, -bc, bc)
    b1f = 1.0 / np.sqrt(FEAT)
    w1 = jax.random.uniform(kw1, (HID, FEAT), jnp.float32, -b1f, b1f)
    b1 = jax.random.uniform(kb1, (HID,), jnp.float32, -b1f, b1f)
    b2f = 1.0 / np.sqrt(HID)
    w2 = jax.random.uniform(kw2, (OUT, HID), jnp.float32, -b2f, b2f)
    b2 = jax.random.uniform(kb2, (OUT,), jnp.float32, -b2f, b2f)

    out = tiny_model_forward(x, conv_w, conv_b, w1, b1, w2, b2)
    out = jax.block_until_ready(out)

    ref = reference_forward(x, conv_w, conv_b, w1, b1, w2, b2)
    np.testing.assert_allclose(np.asarray(out), np.asarray(ref), rtol=1e-4, atol=1e-4)
    assert out.shape == (N, OUT)
    print("KERNEL_OK")
</pallas_src>

<mosaic_0001>
module attributes {stable_mosaic.version = 11 : i64} {
  func.func @tiny_model_kernel(%arg0: memref<136x128xf32, #tpu.memory_space<vmem>>, %arg1: memref<128x10xf32, #tpu.memory_space<vmem>>, %arg2: memref<1xf32, #tpu.memory_space<smem>>, %arg3: memref<17x10x40xf32, #tpu.memory_space<vmem>>, %arg4: memref<1x40xf32, #tpu.memory_space<vmem>>, %arg5: memref<40x128xf32, #tpu.memory_space<vmem>>, %arg6: memref<1x128xf32, #tpu.memory_space<vmem>>, %arg7: memref<8x128xf32, #tpu.memory_space<vmem>>) attributes {dimension_semantics = [], scalar_prefetch = 0 : i64, scratch_operands = 0 : i64, tpu.core_type = #tpu.core_type<tc>} {
    %c0 = arith.constant 0 : index
    %0 = memref.load %arg2[%c0] : memref<1xf32, #tpu.memory_space<smem>>
    %c0_0 = arith.constant 0 : index
    %c0_1 = arith.constant 0 : index
    %1 = vector.load %arg0[%c0_0, %c0_1] : memref<136x128xf32, #tpu.memory_space<vmem>>, vector<136x128xf32>
    %c0_2 = arith.constant 0 : index
    %c0_3 = arith.constant 0 : index
    %2 = vector.load %arg1[%c0_2, %c0_3] : memref<128x10xf32, #tpu.memory_space<vmem>>, vector<128x10xf32>
    %cst = arith.constant dense<0.000000e+00> : vector<136x10xf32>
    %3 = tpu.matmul %1, %2, %cst {dimension_numbers = #tpu.dot_dimension_numbers<[1], [0], [0], [1], [0, 0, 1, 1], [], []>} : vector<136x128xf32>, vector<128x10xf32>, vector<136x10xf32> -> vector<136x10xf32>
    %4 = vector.broadcast %0 : f32 to vector<136x10xf32>
    %5 = arith.addf %3, %4 : vector<136x10xf32>
    %cst_4 = arith.constant 0.000000e+00 : f32
    %6 = vector.broadcast %cst_4 : f32 to vector<136x10xf32>
    %7 = arith.maximumf %5, %6 : vector<136x10xf32>
    %8 = vector.extract_strided_slice %7 {offsets = [0, 0], sizes = [8, 10], strides = [1, 1]} : vector<136x10xf32> to vector<8x10xf32>
    %c0_5 = arith.constant 0 : index
    %c0_6 = arith.constant 0 : index
    %c0_7 = arith.constant 0 : index
    %9 = vector.load %arg3[%c0_5, %c0_6, %c0_7] : memref<17x10x40xf32, #tpu.memory_space<vmem>>, vector<1x10x40xf32>
    %10 = vector.shape_cast %9 : vector<1x10x40xf32> to vector<10x40xf32>
    %cst_8 = arith.constant dense<0.000000e+00> : vector<8x40xf32>
    %11 = tpu.matmul %8, %10, %cst_8 {dimension_numbers = #tpu.dot_dimension_numbers<[1], [0], [0], [1], [0, 0, 1, 1], [], []>} : vector<8x10xf32>, vector<10x40xf32>, vector<8x40xf32> -> vector<8x40xf32>
    %12 = vector.extract_strided_slice %7 {offsets = [8, 0], sizes = [8, 10], strides = [1, 1]} : vector<136x10xf32> to vector<8x10xf32>
    %c1 = arith.constant 1 : index
    %c0_9 = arith.constant 0 : index
    %c0_10 = arith.constant 0 : index
    %13 = vector.load %arg3[%c1, %c0_9, %c0_10] : memref<17x10x40xf32, #tpu.memory_space<vmem>>, vector<1x10x40xf32>
    %14 = vector.shape_cast %13 : vector<1x10x40xf32> to vector<10x40xf32>
    %cst_11 = arith.constant dense<0.000000e+00> : vector<8x40xf32>
    %15 = tpu.matmul %12, %14, %cst_11 {dimension_numbers = #tpu.dot_dimension_numbers<[1], [0], [0], [1], [0, 0, 1, 1], [], []>} : vector<8x10xf32>, vector<10x40xf32>, vector<8x40xf32> -> vector<8x40xf32>
    %16 = arith.addf %11, %15 : vector<8x40xf32>
    %17 = vector.extract_strided_slice %7 {offsets = [16, 0], sizes = [8, 10], strides = [1, 1]} : vector<136x10xf32> to vector<8x10xf32>
    %c2 = arith.constant 2 : index
    %c0_12 = arith.constant 0 : index
    %c0_13 = arith.constant 0 : index
    %18 = vector.load %arg3[%c2, %c0_12, %c0_13] : memref<17x10x40xf32, #tpu.memory_space<vmem>>, vector<1x10x40xf32>
    %19 = vector.shape_cast %18 : vector<1x10x40xf32> to vector<10x40xf32>
    %cst_14 = arith.constant dense<0.000000e+00> : vector<8x40xf32>
    %20 = tpu.matmul %17, %19, %cst_14 {dimension_numbers = #tpu.dot_dimension_numbers<[1], [0], [0], [1], [0, 0, 1, 1], [], []>} : vector<8x10xf32>, vector<10x40xf32>, vector<8x40xf32> -> vector<8x40xf32>
    %21 = arith.addf %16, %20 : vector<8x40xf32>
    %22 = vector.extract_strided_slice %7 {offsets = [24, 0], sizes = [8, 10], strides = [1, 1]} : vector<136x10xf32> to vector<8x10xf32>
    %c3 = arith.constant 3 : index
    %c0_15 = arith.constant 0 : index
    %c0_16 = arith.constant 0 : index
    %23 = vector.load %arg3[%c3, %c0_15, %c0_16] : memref<17x10x40xf32, #tpu.memory_space<vmem>>, vector<1x10x40xf32>
    %24 = vector.shape_cast %23 : vector<1x10x40xf32> to vector<10x40xf32>
    %cst_17 = arith.constant dense<0.000000e+00> : vector<8x40xf32>
    %25 = tpu.matmul %22, %24, %cst_17 {dimension_numbers = #tpu.dot_dimension_numbers<[1], [0], [0], [1], [0, 0, 1, 1], [], []>} : vector<8x10xf32>, vector<10x40xf32>, vector<8x40xf32> -> vector<8x40xf32>
    %26 = arith.addf %21, %25 : vector<8x40xf32>
    %27 = vector.extract_strided_slice %7 {offsets = [32, 0], sizes = [8, 10], strides = [1, 1]} : vector<136x10xf32> to vector<8x10xf32>
    %c4 = arith.constant 4 : index
    %c0_18 = arith.constant 0 : index
    %c0_19 = arith.constant 0 : index
    %28 = vector.load %arg3[%c4, %c0_18, %c0_19] : memref<17x10x40xf32, #tpu.memory_space<vmem>>, vector<1x10x40xf32>
    %29 = vector.shape_cast %28 : vector<1x10x40xf32> to vector<10x40xf32>
    %cst_20 = arith.constant dense<0.000000e+00> : vector<8x40xf32>
    %30 = tpu.matmul %27, %29, %cst_20 {dimension_numbers = #tpu.dot_dimension_numbers<[1], [0], [0], [1], [0, 0, 1, 1], [], []>} : vector<8x10xf32>, vector<10x40xf32>, vector<8x40xf32> -> vector<8x40xf32>
    %31 = arith.addf %26, %30 : vector<8x40xf32>
    %32 = vector.extract_strided_slice %7 {offsets = [40, 0], sizes = [8, 10], strides = [1, 1]} : vector<136x10xf32> to vector<8x10xf32>
    %c5 = arith.constant 5 : index
    %c0_21 = arith.constant 0 : index
    %c0_22 = arith.constant 0 : index
    %33 = vector.load %arg3[%c5, %c0_21, %c0_22] : memref<17x10x40xf32, #tpu.memory_space<vmem>>, vector<1x10x40xf32>
    %34 = vector.shape_cast %33 : vector<1x10x40xf32> to vector<10x40xf32>
    %cst_23 = arith.constant dense<0.000000e+00> : vector<8x40xf32>
    %35 = tpu.matmul %32, %34, %cst_23 {dimension_numbers = #tpu.dot_dimension_numbers<[1], [0], [0], [1], [0, 0, 1, 1], [], []>} : vector<8x10xf32>, vector<10x40xf32>, vector<8x40xf32> -> vector<8x40xf32>
    %36 = arith.addf %31, %35 : vector<8x40xf32>
    %37 = vector.extract_strided_slice %7 {offsets = [48, 0], sizes = [8, 10], strides = [1, 1]} : vector<136x10xf32> to vector<8x10xf32>
    %c6 = arith.constant 6 : index
    %c0_24 = arith.constant 0 : index
    %c0_25 = arith.constant 0 : index
    %38 = vector.load %arg3[%c6, %c0_24, %c0_25] : memref<17x10x40xf32, #tpu.memory_space<vmem>>, vector<1x10x40xf32>
    %39 = vector.shape_cast %38 : vector<1x10x40xf32> to vector<10x40xf32>
    %cst_26 = arith.constant dense<0.000000e+00> : vector<8x40xf32>
    %40 = tpu.matmul %37, %39, %cst_26 {dimension_numbers = #tpu.dot_dimension_numbers<[1], [0], [0], [1], [0, 0, 1, 1], [], []>} : vector<8x10xf32>, vector<10x40xf32>, vector<8x40xf32> -> vector<8x40xf32>
    %41 = arith.addf %36, %40 : vector<8x40xf32>
    %42 = vector.extract_strided_slice %7 {offsets = [56, 0], sizes = [8, 10], strides = [1, 1]} : vector<136x10xf32> to vector<8x10xf32>
    %c7 = arith.constant 7 : index
    %c0_27 = arith.constant 0 : index
    %c0_28 = arith.constant 0 : index
    %43 = vector.load %arg3[%c7, %c0_27, %c0_28] : memref<17x10x40xf32, #tpu.memory_space<vmem>>, vector<1x10x40xf32>
    %44 = vector.shape_cast %43 : vector<1x10x40xf32> to vector<10x40xf32>
    %cst_29 = arith.constant dense<0.000000e+00> : vector<8x40xf32>
    %45 = tpu.matmul %42, %44, %cst_29 {dimension_numbers = #tpu.dot_dimension_numbers<[1], [0], [0], [1], [0, 0, 1, 1], [], []>} : vector<8x10xf32>, vector<10x40xf32>, vector<8x40xf32> -> vector<8x40xf32>
    %46 = arith.addf %41, %45 : vector<8x40xf32>
    %47 = vector.extract_strided_slice %7 {offsets = [64, 0], sizes = [8, 10], strides = [1, 1]} : vector<136x10xf32> to vector<8x10xf32>
    %c8 = arith.constant 8 : index
    %c0_30 = arith.constant 0 : index
    %c0_31 = arith.constant 0 : index
    %48 = vector.load %arg3[%c8, %c0_30, %c0_31] : memref<17x10x40xf32, #tpu.memory_space<vmem>>, vector<1x10x40xf32>
    %49 = vector.shape_cast %48 : vector<1x10x40xf32> to vector<10x40xf32>
    %cst_32 = arith.constant dense<0.000000e+00> : vector<8x40xf32>
    %50 = tpu.matmul %47, %49, %cst_32 {dimension_numbers = #tpu.dot_dimension_numbers<[1], [0], [0], [1], [0, 0, 1, 1], [], []>} : vector<8x10xf32>, vector<10x40xf32>, vector<8x40xf32> -> vector<8x40xf32>
    %51 = arith.addf %46, %50 : vector<8x40xf32>
    %52 = vector.extract_strided_slice %7 {offsets = [72, 0], sizes = [8, 10], strides = [1, 1]} : vector<136x10xf32> to vector<8x10xf32>
    %c9 = arith.constant 9 : index
    %c0_33 = arith.constant 0 : index
    %c0_34 = arith.constant 0 : index
    %53 = vector.load %arg3[%c9, %c0_33, %c0_34] : memref<17x10x40xf32, #tpu.memory_space<vmem>>, vector<1x10x40xf32>
    %54 = vector.shape_cast %53 : vector<1x10x40xf32> to vector<10x40xf32>
    %cst_35 = arith.constant dense<0.000000e+00> : vector<8x40xf32>
    %55 = tpu.matmul %52, %54, %cst_35 {dimension_numbers = #tpu.dot_dimension_numbers<[1], [0], [0], [1], [0, 0, 1, 1], [], []>} : vector<8x10xf32>, vector<10x40xf32>, vector<8x40xf32> -> vector<8x40xf32>
    %56 = arith.addf %51, %55 : vector<8x40xf32>
    %57 = vector.extract_strided_slice %7 {offsets = [80, 0], sizes = [8, 10], strides = [1, 1]} : vector<136x10xf32> to vector<8x10xf32>
    %c10 = arith.constant 10 : index
    %c0_36 = arith.constant 0 : index
    %c0_37 = arith.constant 0 : index
    %58 = vector.load %arg3[%c10, %c0_36, %c0_37] : memref<17x10x40xf32, #tpu.memory_space<vmem>>, vector<1x10x40xf32>
    %59 = vector.shape_cast %58 : vector<1x10x40xf32> to vector<10x40xf32>
    %cst_38 = arith.constant dense<0.000000e+00> : vector<8x40xf32>
    %60 = tpu.matmul %57, %59, %cst_38 {dimension_numbers = #tpu.dot_dimension_numbers<[1], [0], [0], [1], [0, 0, 1, 1], [], []>} : vector<8x10xf32>, vector<10x40xf32>, vector<8x40xf32> -> vector<8x40xf32>
    %61 = arith.addf %56, %60 : vector<8x40xf32>
    %62 = vector.extract_strided_slice %7 {offsets = [88, 0], sizes = [8, 10], strides = [1, 1]} : vector<136x10xf32> to vector<8x10xf32>
    %c11 = arith.constant 11 : index
    %c0_39 = arith.constant 0 : index
    %c0_40 = arith.constant 0 : index
    %63 = vector.load %arg3[%c11, %c0_39, %c0_40] : memref<17x10x40xf32, #tpu.memory_space<vmem>>, vector<1x10x40xf32>
    %64 = vector.shape_cast %63 : vector<1x10x40xf32> to vector<10x40xf32>
    %cst_41 = arith.constant dense<0.000000e+00> : vector<8x40xf32>
    %65 = tpu.matmul %62, %64, %cst_41 {dimension_numbers = #tpu.dot_dimension_numbers<[1], [0], [0], [1], [0, 0, 1, 1], [], []>} : vector<8x10xf32>, vector<10x40xf32>, vector<8x40xf32> -> vector<8x40xf32>
    %66 = arith.addf %61, %65 : vector<8x40xf32>
    %67 = vector.extract_strided_slice %7 {offsets = [96, 0], sizes = [8, 10], strides = [1, 1]} : vector<136x10xf32> to vector<8x10xf32>
    %c12 = arith.constant 12 : index
    %c0_42 = arith.constant 0 : index
    %c0_43 = arith.constant 0 : index
    %68 = vector.load %arg3[%c12, %c0_42, %c0_43] : memref<17x10x40xf32, #tpu.memory_space<vmem>>, vector<1x10x40xf32>
    %69 = vector.shape_cast %68 : vector<1x10x40xf32> to vector<10x40xf32>
    %cst_44 = arith.constant dense<0.000000e+00> : vector<8x40xf32>
    %70 = tpu.matmul %67, %69, %cst_44 {dimension_numbers = #tpu.dot_dimension_numbers<[1], [0], [0], [1], [0, 0, 1, 1], [], []>} : vector<8x10xf32>, vector<10x40xf32>, vector<8x40xf32> -> vector<8x40xf32>
    %71 = arith.addf %66, %70 : vector<8x40xf32>
    %72 = vector.extract_strided_slice %7 {offsets = [104, 0], sizes = [8, 10], strides = [1, 1]} : vector<136x10xf32> to vector<8x10xf32>
    %c13 = arith.constant 13 : index
    %c0_45 = arith.constant 0 : index
    %c0_46 = arith.constant 0 : index
    %73 = vector.load %arg3[%c13, %c0_45, %c0_46] : memref<17x10x40xf32, #tpu.memory_space<vmem>>, vector<1x10x40xf32>
    %74 = vector.shape_cast %73 : vector<1x10x40xf32> to vector<10x40xf32>
    %cst_47 = arith.constant dense<0.000000e+00> : vector<8x40xf32>
    %75 = tpu.matmul %72, %74, %cst_47 {dimension_numbers = #tpu.dot_dimension_numbers<[1], [0], [0], [1], [0, 0, 1, 1], [], []>} : vector<8x10xf32>, vector<10x40xf32>, vector<8x40xf32> -> vector<8x40xf32>
    %76 = arith.addf %71, %75 : vector<8x40xf32>
    %77 = vector.extract_strided_slice %7 {offsets = [112, 0], sizes = [8, 10], strides = [1, 1]} : vector<136x10xf32> to vector<8x10xf32>
    %c14 = arith.constant 14 : index
    %c0_48 = arith.constant 0 : index
    %c0_49 = arith.constant 0 : index
    %78 = vector.load %arg3[%c14, %c0_48, %c0_49] : memref<17x10x40xf32, #tpu.memory_space<vmem>>, vector<1x10x40xf32>
    %79 = vector.shape_cast %78 : vector<1x10x40xf32> to vector<10x40xf32>
    %cst_50 = arith.constant dense<0.000000e+00> : vector<8x40xf32>
    %80 = tpu.matmul %77, %79, %cst_50 {dimension_numbers = #tpu.dot_dimension_numbers<[1], [0], [0], [1], [0, 0, 1, 1], [], []>} : vector<8x10xf32>, vector<10x40xf32>, vector<8x40xf32> -> vector<8x40xf32>
    %81 = arith.addf %76, %80 : vector<8x40xf32>
    %82 = vector.extract_strided_slice %7 {offsets = [120, 0], sizes = [8, 10], strides = [1, 1]} : vector<136x10xf32> to vector<8x10xf32>
    %c15 = arith.constant 15 : index
    %c0_51 = arith.constant 0 : index
    %c0_52 = arith.constant 0 : index
    %83 = vector.load %arg3[%c15, %c0_51, %c0_52] : memref<17x10x40xf32, #tpu.memory_space<vmem>>, vector<1x10x40xf32>
    %84 = vector.shape_cast %83 : vector<1x10x40xf32> to vector<10x40xf32>
    %cst_53 = arith.constant dense<0.000000e+00> : vector<8x40xf32>
    %85 = tpu.matmul %82, %84, %cst_53 {dimension_numbers = #tpu.dot_dimension_numbers<[1], [0], [0], [1], [0, 0, 1, 1], [], []>} : vector<8x10xf32>, vector<10x40xf32>, vector<8x40xf32> -> vector<8x40xf32>
    %86 = arith.addf %81, %85 : vector<8x40xf32>
    %87 = vector.extract_strided_slice %7 {offsets = [128, 0], sizes = [8, 10], strides = [1, 1]} : vector<136x10xf32> to vector<8x10xf32>
    %c16 = arith.constant 16 : index
    %c0_54 = arith.constant 0 : index
    %c0_55 = arith.constant 0 : index
    %88 = vector.load %arg3[%c16, %c0_54, %c0_55] : memref<17x10x40xf32, #tpu.memory_space<vmem>>, vector<1x10x40xf32>
    %89 = vector.shape_cast %88 : vector<1x10x40xf32> to vector<10x40xf32>
    %cst_56 = arith.constant dense<0.000000e+00> : vector<8x40xf32>
    %90 = tpu.matmul %87, %89, %cst_56 {dimension_numbers = #tpu.dot_dimension_numbers<[1], [0], [0], [1], [0, 0, 1, 1], [], []>} : vector<8x10xf32>, vector<10x40xf32>, vector<8x40xf32> -> vector<8x40xf32>
    %91 = arith.addf %86, %90 : vector<8x40xf32>
    %c0_57 = arith.constant 0 : index
    %c0_58 = arith.constant 0 : index
    %92 = vector.load %arg4[%c0_57, %c0_58] : memref<1x40xf32, #tpu.memory_space<vmem>>, vector<1x40xf32>
    %93 = vector.broadcast %92 : vector<1x40xf32> to vector<8x40xf32>
    %94 = arith.addf %91, %93 : vector<8x40xf32>
    %cst_59 = arith.constant 0.000000e+00 : f32
    %95 = vector.broadcast %cst_59 : f32 to vector<8x40xf32>
    %96 = arith.maximumf %94, %95 : vector<8x40xf32>
    %c0_60 = arith.constant 0 : index
    %c0_61 = arith.constant 0 : index
    %97 = vector.load %arg5[%c0_60, %c0_61] : memref<40x128xf32, #tpu.memory_space<vmem>>, vector<40x128xf32>
    %cst_62 = arith.constant dense<0.000000e+00> : vector<8x128xf32>
    %98 = tpu.matmul %96, %97, %cst_62 {dimension_numbers = #tpu.dot_dimension_numbers<[1], [0], [0], [1], [0, 0, 1, 1], [], []>} : vector<8x40xf32>, vector<40x128xf32>, vector<8x128xf32> -> vector<8x128xf32>
    %c0_63 = arith.constant 0 : index
    %c0_64 = arith.constant 0 : index
    %99 = vector.load %arg6[%c0_63, %c0_64] : memref<1x128xf32, #tpu.memory_space<vmem>>, vector<1x128xf32>
    %100 = vector.broadcast %99 : vector<1x128xf32> to vector<8x128xf32>
    %101 = arith.addf %98, %100 : vector<8x128xf32>
    %c0_65 = arith.constant 0 : index
    %c0_66 = arith.constant 0 : index
    %102 = vector.load %arg7[%c0_65, %c0_66] : memref<8x128xf32, #tpu.memory_space<vmem>>, vector<8x128xf32>
    tpu.vector_store %arg7[%c0_65, %c0_66], %101 {strides = array<i32>} : memref<8x128xf32, #tpu.memory_space<vmem>>, vector<8x128xf32>,
    return
  }
}

</mosaic_0001>

<bundles_post_ra>
// kernel: tiny_model_forward.1
= control target key start
LH: loop header
LB: loop body
LE: loop exit
PB: predicated region body
PF: predicated region fallthrough
CT: control target
= control target key end

     0   :  { %v2064_v0 = vmov 0.0   ;;  %vm2065_vm0 = vmmov 0   ;;  %vm238_vm1 = vcmask 1041408   ;;  %vm234_vm2 = vcmask 80896   ;;  %s2512_s1 = inlined_call_operand.vmem [shape: f32[128,10], index: 1, kind: input, shape index: {}]   ;;  %s2513_s0 = inlined_call_operand.vmem [shape: f32[136,128], index: 0, kind: input, shape index: {}]   ;;  %s2514_s3 = inlined_call_operand.vmem [shape: f32[17,10,40], index: 3, kind: input, shape index: {}]   ;;  %s2515_s2 = inlined_call_operand.<no memory space> [shape: f32[1], index: 2, kind: input, shape index: {}]   ;;  %s2516_s5 = inlined_call_operand.vmem [shape: f32[40,128], index: 5, kind: input, shape index: {}]   ;;  %s2517_s4 = inlined_call_operand.vmem [shape: f32[1,40], index: 4, kind: input, shape index: {}]   ;;  %s2518_s6 = inlined_call_operand.vmem [shape: f32[1,128], index: 6, kind: input, shape index: {}]   ;;  %s2519_s7 = inlined_call_operand.vmem [shape: f32[8,128], index: 7, kind: output, shape index: {}]  }
   0x1   :  { %1847 = vmatprep.subr.mxu0 %v2064_v0  ;;  %v60_v1 = vld [vmem:[%s2512_s1 + $0x78] sm:$0xff]  ;;  %v59_v2 = vld [vmem:[%s2512_s1 + $0x70] sm:$0xff]  ;;  %1879 = vmatprep.mubr.msk.f32.mxu0 %vm2065_vm0, %v2064_v0  ;;  %v58_v3 = vld [vmem:[%s2512_s1 + $0x68] sm:$0xff]  ;;  %v2270_v38 = vstv %s2515_s2  ;;  %vm1609_vm3 = vcmask 326656  }
   0x2   :  { %1848 = vmatpush3.msra.mxu0 %v60_v1  ;;  %1930 = vmatprep.subr.mxu1 %v2064_v0  ;;  %v57_v4 = vld [vmem:[%s2512_s1 + $0x60] sm:$0xff]  ;;  %v56_v5 = vld [vmem:[%s2512_s1 + $0x58] sm:$0xff]  ;;  %v55_v6 = vld [vmem:[%s2512_s1 + $0x50] sm:$0xff] }
   0x3   :  { %1849 = vmatprep.subr.mxu0 %v2064_v0  ;;  %1934 = vmatprep.mubr.msk.f32.mxu1 %vm2065_vm0, %v2064_v0  ;;  %v54_v7 = vld [vmem:[%s2512_s1 + $0x48] sm:$0xff]  ;;  %v53_v8 = vld [vmem:[%s2512_s1 + $0x40] sm:$0xff]  ;;  %v52_v9 = vld [vmem:[%s2512_s1 + $0x38] sm:$0xff] }
   0x4   :  { %1850 = vmatpush3.msra.mxu0 %v59_v2  ;;  %v51_v10 = vld [vmem:[%s2512_s1 + $0x30] sm:$0xff]  ;;  %v50_v11 = vld [vmem:[%s2512_s1 + $0x28] sm:$0xff]  ;;  %v49_v12 = vld [vmem:[%s2512_s1 + $0x20] sm:$0xff] }
   0x5   :  { %1851 = vmatprep.subr.mxu0 %v2064_v0  ;;  %v48_v13 = vld [vmem:[%s2512_s1 + $0x18] sm:$0xff]  ;;  %v47_v14 = vld [vmem:[%s2512_s1 + $0x10] sm:$0xff]  ;;  %v46_v15 = vld [vmem:[%s2512_s1 + $0x8] sm:$0xff] }
   0x6   :  { %1852 = vmatpush3.msra.mxu0 %v58_v3  ;;  %v45_v16 = vld [vmem:[%s2512_s1] sm:$0xff]  ;;  %v29_v18 = vld [vmem:[%s2513_s0 + $0x8] sm:$0xff]  ;;  %v30_v19 = vld [vmem:[%s2513_s0 + $0x10] sm:$0xff] }
   0x7   :  { %1853 = vmatprep.subr.mxu0 %v2064_v0  ;;  %v28_v17 = vld [vmem:[%s2513_s0] sm:$0xff]  ;;  %v31_v20 = vld [vmem:[%s2513_s0 + $0x18] sm:$0xff]  ;;  %v33_v22 = vld [vmem:[%s2513_s0 + $0x28] sm:$0xff] }
   0x8   :  { %1854 = vmatpush3.msra.mxu0 %v57_v4  ;;  %v32_v21 = vld [vmem:[%s2513_s0 + $0x20] sm:$0xff]  ;;  %v34_v23 = vld [vmem:[%s2513_s0 + $0x30] sm:$0xff]  ;;  %v35_v24 = vld [vmem:[%s2513_s0 + $0x38] sm:$0xff] }
   0x9   :  { %1855 = vmatprep.subr.mxu0 %v2064_v0  ;;  %v36_v25 = vld [vmem:[%s2513_s0 + $0x40] sm:$0xff]  ;;  %v37_v26 = vld [vmem:[%s2513_s0 + $0x48] sm:$0xff]  ;;  %v38_v27 = vld [vmem:[%s2513_s0 + $0x50] sm:$0xff] }
   0xa   :  { %1856 = vmatpush3.msra.mxu0 %v56_v5  ;;  %v39_v28 = vld [vmem:[%s2513_s0 + $0x58] sm:$0xff]  ;;  %v40_v29 = vld [vmem:[%s2513_s0 + $0x60] sm:$0xff]  ;;  %v41_v30 = vld [vmem:[%s2513_s0 + $0x68] sm:$0xff] }
   0xb   :  { %1857 = vmatprep.subr.mxu0 %v2064_v0  ;;  %v42_v31 = vld [vmem:[%s2513_s0 + $0x70] sm:$0xff]  ;;  %v43_v32 = vld [vmem:[%s2513_s0 + $0x78] sm:$0xff]  ;;  %v44_v33 = vld [vmem:[%s2513_s0 + $0x80] sm:$0xff] }
   0xc   :  { %1858 = vmatpush3.msra.mxu0 %v55_v6  ;;  %v1689_v34 = vld [vmem:[%s2514_s3 + $0x18] sm:$0x3]  ;;  %v1688_v35 = vld [vmem:[%s2514_s3 + $0x10] sm:$0xff]  ;;  %v230_v44 = vld [vmem:[%s2514_s3 + $0x8] sm:$0x3] }
   0xd   :  { %1859 = vmatprep.subr.mxu0 %v2064_v0  ;;  %1931 = vmatpush3.msk.msra.mxu1 %vm238_vm1, %v1689_v34  ;;  %v229_v47 = vld [vmem:[%s2514_s3] sm:$0xff]  ;;  %v1695_v50 = vld [vmem:[%s2514_s3 + $0x28] sm:$0x3]  ;;  %v1699_v56 = vld [vmem:[%s2514_s3 + $0x38] sm:$0x3] }
   0xe   :  { %1860 = vmatpush3.msra.mxu0 %v54_v7  ;;  %1932 = vmatprep.subr.mxu1 %v2064_v0  ;;  %v1694_v54 = vld [vmem:[%s2514_s3 + $0x20] sm:$0xff]  ;;  %v1698_v60 = vld [vmem:[%s2514_s3 + $0x30] sm:$0xff]  ;;  %v1703_v62 = vld [vmem:[%s2514_s3 + $0x48] sm:$0x3] }
   0xf   :  { %1861 = vmatprep.subr.mxu0 %v2064_v0  ;;  %1933 = vmatpush3.msra.mxu1 %v1688_v35  ;;  %v1702_v3 = vld [vmem:[%s2514_s3 + $0x40] sm:$0xff]  ;;  %v1707_v5 = vld [vmem:[%s2514_s3 + $0x58] sm:$0x3]  ;;  %v1727_v35 = vld [vmem:[%s2514_s3 + $0xa8] sm:$0x3] }
  0x10   :  { %1862 = vmatpush3.msra.mxu0 %v53_v8  ;;  %1937 = vmatprep.subr.mxu1 %v2064_v0 }
  0x11   :  { %1863 = vmatprep.subr.mxu0 %v2064_v0 }
  0x12   :  { %1864 = vmatpush3.msra.mxu0 %v52_v9  ;;  %v1706_v9 = vld [vmem:[%s2514_s3 + $0x50] sm:$0xff] }
  0x13   :  { %1865 = vmatprep.subr.mxu0 %v2064_v0 }
  0x14   :  { %1866 = vmatpush3.msra.mxu0 %v51_v10 }
  0x15   :  { %1867 = vmatprep.subr.mxu0 %v2064_v0 }
  0x16   :  { %1868 = vmatpush3.msra.mxu0 %v50_v11  ;;  %v1711_v11 = vld [vmem:[%s2514_s3 + $0x68] sm:$0x3] }
  0x17   :  { %1869 = vmatprep.subr.mxu0 %v2064_v0 }
  0x18   :  { %1870 = vmatpush3.msra.mxu0 %v49_v12 }
  0x19   :  { %1871 = vmatprep.subr.mxu0 %v2064_v0 }
  0x1a   :  { %1872 = vmatpush3.msra.mxu0 %v48_v13 }
  0x1b   :  { %1873 = vmatprep.subr.mxu0 %v2064_v0 }
  0x1c   :  { %1874 = vmatpush3.msra.mxu0 %v47_v14 }
  0x1d   :  { %1875 = vmatprep.subr.mxu0 %v2064_v0 }
  0x1e   :  { %1876 = vmatpush3.msra.mxu0 %v46_v15  ;;  %v1710_v15 = vld [vmem:[%s2514_s3 + $0x60] sm:$0xff] }
  0x1f   :  { %1877 = vmatprep.subr.mxu0 %v2064_v0 }
  0x20   :  { %1878 = vmatpush3.msra.mxu0 %v45_v16 }
  0x21   :  { %1880 = vmatmul.mubr.f32.vlgmr.msra.gmra.mxu0 %v28_v17  ;;  %v1715_v17 = vld [vmem:[%s2514_s3 + $0x78] sm:$0x3] }
  0x22   :  { %1882 = vmatprep.mubr.msk.f32.mxu0 %vm2065_vm0, %v2064_v0 }
  0x25   :  { %1883 = vmatmul.mubr.f32.gmra.mxu0 %v29_v18 }
  0x26   :  { %1885 = vmatprep.mubr.msk.f32.mxu0 %vm2065_vm0, %v2064_v0 }
  0x29   :  { %1886 = vmatmul.mubr.f32.gmra.mxu0 %v30_v19 }
  0x2a   :  { %1888 = vmatprep.mubr.msk.f32.mxu0 %vm2065_vm0, %v2064_v0 }
  0x2d   :  { %1889 = vmatmul.mubr.f32.gmra.mxu0 %v31_v20 }
  0x2e   :  { %1891 = vmatprep.mubr.msk.f32.mxu0 %vm2065_vm0, %v2064_v0 }
  0x31   :  { %1892 = vmatmul.mubr.f32.gmra.mxu0 %v32_v21  ;;  %v1714_v21 = vld [vmem:[%s2514_s3 + $0x70] sm:$0xff] }
  0x32   :  { %1894 = vmatprep.mubr.msk.f32.mxu0 %vm2065_vm0, %v2064_v0 }
  0x35   :  { %1895 = vmatmul.mubr.f32.gmra.mxu0 %v33_v22 }
  0x36   :  { %1897 = vmatprep.mubr.msk.f32.mxu0 %vm2065_vm0, %v2064_v0 }
  0x39   :  { %1898 = vmatmul.mubr.f32.gmra.mxu0 %v34_v23  ;;  %v1719_v23 = vld [vmem:[%s2514_s3 + $0x88] sm:$0x3] }
  0x3a   :  { %1900 = vmatprep.mubr.msk.f32.mxu0 %vm2065_vm0, %v2064_v0 }
  0x3d   :  { %1901 = vmatmul.mubr.f32.gmra.mxu0 %v35_v24 }
  0x3e   :  { %1903 = vmatprep.mubr.msk.f32.mxu0 %vm2065_vm0, %v2064_v0 }
  0x41   :  { %1904 = vmatmul.mubr.f32.gmra.mxu0 %v36_v25 }
  0x42   :  { %1906 = vmatprep.mubr.msk.f32.mxu0 %vm2065_vm0, %v2064_v0 }
  0x45   :  { %1907 = vmatmul.mubr.f32.gmra.mxu0 %v37_v26 }
  0x46   :  { %1909 = vmatprep.mubr.msk.f32.mxu0 %vm2065_vm0, %v2064_v0 }
  0x49   :  { %1910 = vmatmul.mubr.f32.gmra.mxu0 %v38_v27  ;;  %v1718_v27 = vld [vmem:[%s2514_s3 + $0x80] sm:$0xff] }
  0x4a   :  { %1912 = vmatprep.mubr.msk.f32.mxu0 %vm2065_vm0, %v2064_v0 }
  0x4d   :  { %1913 = vmatmul.mubr.f32.gmra.mxu0 %v39_v28 }
  0x4e   :  { %1915 = vmatprep.mubr.msk.f32.mxu0 %vm2065_vm0, %v2064_v0 }
  0x51   :  { %1916 = vmatmul.mubr.f32.gmra.mxu0 %v40_v29  ;;  %v1723_v29 = vld [vmem:[%s2514_s3 + $0x98] sm:$0x3] }
  0x52   :  { %1918 = vmatprep.mubr.msk.f32.mxu0 %vm2065_vm0, %v2064_v0 }
  0x55   :  { %1919 = vmatmul.mubr.f32.gmra.mxu0 %v41_v30 }
  0x56   :  { %1921 = vmatprep.mubr.msk.f32.mxu0 %vm2065_vm0, %v2064_v0 }
  0x59   :  { %1922 = vmatmul.mubr.f32.gmra.mxu0 %v42_v31 }
  0x5a   :  { %1924 = vmatprep.mubr.msk.f32.mxu0 %vm2065_vm0, %v2064_v0 }
  0x5d   :  { %1925 = vmatmul.mubr.f32.gmra.mxu0 %v43_v32 }
  0x5e   :  { %1927 = vmatprep.mubr.msk.f32.mxu0 %vm2065_vm0, %v2064_v0 }
  0x61   :  { %1928 = vmatmul.mubr.f32.gmra.mxu0 %v44_v33  ;;  %v1722_v33 = vld [vmem:[%s2514_s3 + $0x90] sm:$0xff] }
  0xe1   :  { %v128_v36 = vpop.f32.mrf.mxu0 }
  0xe2   :  { %v129_v42 = vadd.f32 %v128_v36, %v2270_v38 }
  0xe3   :  { %v1881_v37 = vpop.f32.mrf.mxu0 }
  0xe4   :  { %v212_v49 = vmax.f32 %v129_v42, 0.0  ;;  %v1731_v42 = vld [vmem:[%s2514_s3 + $0xb8] sm:$0x3] }
  0xe5   :  { %v133_v39 = vpop.f32.mrf.mxu0 }
  0xe6   :  { %v134_v40 = vadd.f32 %v133_v39, %v2270_v38 }
  0xe7   :  { %v1884_v41 = vpop.f32.mrf.mxu0 }
  0xe8   :  { %v213_v43 = vmax.f32 %v134_v40, 0.0  ;;  %v1726_v40 = vld [vmem:[%s2514_s3 + $0xa0] sm:$0xff] }
  0xe9   :  { %v138_v45 = vpop.f32.mrf.mxu0 }
  0xea   :  { %1935 = vmatmul.mubr.msk.f32.vlgmr.msra.gmra.mxu1 %vm234_vm2, %v213_v43  ;;  %v139_v46 = vadd.f32 %v138_v45, %v2270_v38 }
  0xeb   :  { %1938 = vmatpush3.msk.msra.mxu1 %vm238_vm1, %v230_v44  ;;  %v1887_v48 = vpop.f32.mrf.mxu0  ;;  %1941 = vmatprep.mubr.msk.f32.mxu1 %vm2065_vm0, %v2064_v0 }
  0xec   :  { %1939 = vmatprep.subr.mxu1 %v2064_v0  ;;  %v214_v52 = vmax.f32 %v139_v46, 0.0  ;;  %v1730_v46 = vld [vmem:[%s2514_s3 + $0xb0] sm:$0xff]  ;;  %v1735_v48 = vld [vmem:[%s2514_s3 + $0xc8] sm:$0x3] }
  0xed   :  { %1940 = vmatpush3.msra.mxu1 %v229_v47  ;;  %v143_v51 = vpop.f32.mrf.mxu0 }
  0xee   :  { %1944 = vmatprep.subr.mxu1 %v2064_v0  ;;  %1942 = vmatmul.mubr.msk.f32.vlgmr.msra.gmra.mxu1 %vm234_vm2, %v212_v49  ;;  %v144_v53 = vadd.f32 %v143_v51, %v2270_v38 }
  0xef   :  { %1945 = vmatpush3.msk.msra.mxu1 %vm238_vm1, %v1695_v50  ;;  %v1890_v55 = vpop.f32.mrf.mxu0  ;;  %1948 = vmatprep.mubr.msk.f32.mxu1 %vm2065_vm0, %v2064_v0 }
  0xf0   :  { %1946 = vmatprep.subr.mxu1 %v2064_v0  ;;  %v215_v58 = vmax.f32 %v144_v53, 0.0 }
  0xf1   :  { %1947 = vmatpush3.msra.mxu1 %v1694_v54  ;;  %v148_v57 = vpop.f32.mrf.mxu0  ;;  %v1739_v54 = vld [vmem:[%s2514_s3 + $0xd8] sm:$0x3] }
  0xf2   :  { %1951 = vmatprep.subr.mxu1 %v2064_v0  ;;  %1949 = vmatmul.mubr.msk.f32.vlgmr.msra.gmra.mxu1 %vm234_vm2, %v214_v52  ;;  %v149_v59 = vadd.f32 %v148_v57, %v2270_v38  ;;  %v1734_v52 = vld [vmem:[%s2514_s3 + $0xc0] sm:$0xff] }
  0xf3   :  { %1952 = vmatpush3.msk.msra.mxu1 %vm238_vm1, %v1699_v56  ;;  %v1893_v61 = vpop.f32.mrf.mxu0  ;;  %1955 = vmatprep.mubr.msk.f32.mxu1 %vm2065_vm0, %v2064_v0 }
  0xf4   :  { %1953 = vmatprep.subr.mxu1 %v2064_v0  ;;  %v216_v1 = vmax.f32 %v149_v59, 0.0 }
  0xf5   :  { %1954 = vmatpush3.msra.mxu1 %v1698_v60  ;;  %v153_v63 = vpop.f32.mrf.mxu0  ;;  %v1743_v60 = vld [vmem:[%s2514_s3 + $0xe8] sm:$0x3] }
  0xf6   :  { %1958 = vmatprep.subr.mxu1 %v2064_v0  ;;  %1956 = vmatmul.mubr.msk.f32.vlgmr.msra.gmra.mxu1 %vm234_vm2, %v215_v58  ;;  %v154_v2 = vadd.f32 %v153_v63, %v2270_v38  ;;  %v1738_v58 = vld [vmem:[%s2514_s3 + $0xd0] sm:$0xff] }
  0xf7   :  { %1959 = vmatpush3.msk.msra.mxu1 %vm238_vm1, %v1703_v62  ;;  %v1896_v4 = vpop.f32.mrf.mxu0  ;;  %1962 = vmatprep.mubr.msk.f32.mxu1 %vm2065_vm0, %v2064_v0 }
  0xf8   :  { %1960 = vmatprep.subr.mxu1 %v2064_v0  ;;  %v217_v7 = vmax.f32 %v154_v2, 0.0 }
  0xf9   :  { %1961 = vmatpush3.msra.mxu1 %v1702_v3  ;;  %v158_v6 = vpop.f32.mrf.mxu0  ;;  %v1747_v3 = vld [vmem:[%s2514_s3 + $0xf8] sm:$0x3] }
  0xfa   :  { %1965 = vmatprep.subr.mxu1 %v2064_v0  ;;  %1963 = vmatmul.mubr.msk.f32.vlgmr.msra.gmra.mxu1 %vm234_vm2, %v216_v1  ;;  %v159_v8 = vadd.f32 %v158_v6, %v2270_v38  ;;  %v1742_v1 = vld [vmem:[%s2514_s3 + $0xe0] sm:$0xff] }
  0xfb   :  { %1966 = vmatpush3.msk.msra.mxu1 %vm238_vm1, %v1707_v5  ;;  %v1899_v10 = vpop.f32.mrf.mxu0  ;;  %1969 = vmatprep.mubr.msk.f32.mxu1 %vm2065_vm0, %v2064_v0 }
  0xfc   :  { %1967 = vmatprep.subr.mxu1 %v2064_v0  ;;  %v218_v13 = vmax.f32 %v159_v8, 0.0 }
  0xfd   :  { %1968 = vmatpush3.msra.mxu1 %v1706_v9  ;;  %v163_v12 = vpop.f32.mrf.mxu0  ;;  %v1751_v9 = vld [vmem:[%s2514_s3 + $0x108] sm:$0x3] }
  0xfe   :  { %1972 = vmatprep.subr.mxu1 %v2064_v0  ;;  %1970 = vmatmul.mubr.msk.f32.vlgmr.msra.gmra.mxu1 %vm234_vm2, %v217_v7  ;;  %v164_v14 = vadd.f32 %v163_v12, %v2270_v38  ;;  %v1746_v7 = vld [vmem:[%s2514_s3 + $0xf0] sm:$0xff]  ;;  %v1600_v12 = vld [vmem:[%s2516_s5 + $0x18] sm:$0xff] }
  0xff   :  { %1973 = vmatpush3.msk.msra.mxu1 %vm238_vm1, %v1711_v11  ;;  %v1902_v16 = vpop.f32.mrf.mxu0  ;;  %1976 = vmatprep.mubr.msk.f32.mxu1 %vm2065_vm0, %v2064_v0  ;;  %v1601_v11 = vld [vmem:[%s2516_s5 + $0x20] sm:$0xff] }
 0x100   :  { %1974 = vmatprep.subr.mxu1 %v2064_v0  ;;  %v219_v19 = vmax.f32 %v164_v14, 0.0  ;;  %v1598_v14 = vld [vmem:[%s2516_s5 + $0x8] sm:$0xff] }
 0x101   :  { %1975 = vmatpush3.msra.mxu1 %v1710_v15  ;;  %v168_v18 = vpop.f32.mrf.mxu0  ;;  %v1597_v15 = vld [vmem:[%s2516_s5] sm:$0xff] }
 0x102   :  { %1979 = vmatprep.subr.mxu1 %v2064_v0  ;;  %1977 = vmatmul.mubr.msk.f32.vlgmr.msra.gmra.mxu1 %vm234_vm2, %v218_v13  ;;  %v169_v20 = vadd.f32 %v168_v18, %v2270_v38  ;;  %v1599_v13 = vld [vmem:[%s2516_s5 + $0x10] sm:$0xff] }
 0x103   :  { %1980 = vmatpush3.msk.msra.mxu1 %vm238_vm1, %v1715_v17  ;;  %v1905_v22 = vpop.f32.mrf.mxu0  ;;  %1983 = vmatprep.mubr.msk.f32.mxu1 %vm2065_vm0, %v2064_v0 }
 0x104   :  { %1981 = vmatprep.subr.mxu1 %v2064_v0  ;;  %v220_v25 = vmax.f32 %v169_v20, 0.0 }
 0x105   :  { %1982 = vmatpush3.msra.mxu1 %v1714_v21  ;;  %v173_v24 = vpop.f32.mrf.mxu0 }
 0x106   :  { %1986 = vmatprep.subr.mxu1 %v2064_v0  ;;  %1984 = vmatmul.mubr.msk.f32.vlgmr.msra.gmra.mxu1 %vm234_vm2, %v219_v19  ;;  %v174_v26 = vadd.f32 %v173_v24, %v2270_v38 }
 0x107   :  { %1987 = vmatpush3.msk.msra.mxu1 %vm238_vm1, %v1719_v23  ;;  %v1908_v28 = vpop.f32.mrf.mxu0  ;;  %1990 = vmatprep.mubr.msk.f32.mxu1 %vm2065_vm0, %v2064_v0 }
 0x108   :  { %1988 = vmatprep.subr.mxu1 %v2064_v0  ;;  %v221_v31 = vmax.f32 %v174_v26, 0.0 }
 0x109   :  { %1989 = vmatpush3.msra.mxu1 %v1718_v27  ;;  %v178_v30 = vpop.f32.mrf.mxu0 }
 0x10a   :  { %1993 = vmatprep.subr.mxu1 %v2064_v0  ;;  %1991 = vmatmul.mubr.msk.f32.vlgmr.msra.gmra.mxu1 %vm234_vm2, %v220_v25  ;;  %v179_v32 = vadd.f32 %v178_v30, %v2270_v38 }
 0x10b   :  { %1994 = vmatpush3.msk.msra.mxu1 %vm238_vm1, %v1723_v29  ;;  %v1911_v34 = vpop.f32.mrf.mxu0  ;;  %1997 = vmatprep.mubr.msk.f32.mxu1 %vm2065_vm0, %v2064_v0 }
 0x10c   :  { %1995 = vmatprep.subr.mxu1 %v2064_v0  ;;  %v222_v37 = vmax.f32 %v179_v32, 0.0 }
 0x10d   :  { %1996 = vmatpush3.msra.mxu1 %v1722_v33  ;;  %v183_v36 = vpop.f32.mrf.mxu0 }
 0x10e   :  { %2000 = vmatprep.subr.mxu1 %v2064_v0  ;;  %1998 = vmatmul.mubr.msk.f32.vlgmr.msra.gmra.mxu1 %vm234_vm2, %v221_v31  ;;  %v184_v39 = vadd.f32 %v183_v36, %v2270_v38 }
 0x10f   :  { %2001 = vmatpush3.msk.msra.mxu1 %vm238_vm1, %v1727_v35  ;;  %v1914_v41 = vpop.f32.mrf.mxu0  ;;  %2004 = vmatprep.mubr.msk.f32.mxu1 %vm2065_vm0, %v2064_v0 }
 0x110   :  { %2002 = vmatprep.subr.mxu1 %v2064_v0  ;;  %v223_v44 = vmax.f32 %v184_v39, 0.0 }
 0x111   :  { %2003 = vmatpush3.msra.mxu1 %v1726_v40  ;;  %v188_v43 = vpop.f32.mrf.mxu0 }
 0x112   :  { %2007 = vmatprep.subr.mxu1 %v2064_v0  ;;  %2005 = vmatmul.mubr.msk.f32.vlgmr.msra.gmra.mxu1 %vm234_vm2, %v222_v37  ;;  %v189_v45 = vadd.f32 %v188_v43, %v2270_v38 }
 0x113   :  { %2008 = vmatpush3.msk.msra.mxu1 %vm238_vm1, %v1731_v42  ;;  %v1917_v47 = vpop.f32.mrf.mxu0  ;;  %2011 = vmatprep.mubr.msk.f32.mxu1 %vm2065_vm0, %v2064_v0 }
 0x114   :  { %2009 = vmatprep.subr.mxu1 %v2064_v0  ;;  %v224_v50 = vmax.f32 %v189_v45, 0.0 }
 0x115   :  { %2010 = vmatpush3.msra.mxu1 %v1730_v46  ;;  %v193_v49 = vpop.f32.mrf.mxu0 }
 0x116   :  { %2014 = vmatprep.subr.mxu1 %v2064_v0  ;;  %2012 = vmatmul.mubr.msk.f32.vlgmr.msra.gmra.mxu1 %vm234_vm2, %v223_v44  ;;  %v194_v51 = vadd.f32 %v193_v49, %v2270_v38 }
 0x117   :  { %2015 = vmatpush3.msk.msra.mxu1 %vm238_vm1, %v1735_v48  ;;  %v1920_v53 = vpop.f32.mrf.mxu0  ;;  %2018 = vmatprep.mubr.msk.f32.mxu1 %vm2065_vm0, %v2064_v0 }
 0x118   :  { %2016 = vmatprep.subr.mxu1 %v2064_v0  ;;  %v225_v56 = vmax.f32 %v194_v51, 0.0 }
 0x119   :  { %2017 = vmatpush3.msra.mxu1 %v1734_v52  ;;  %v198_v55 = vpop.f32.mrf.mxu0 }
 0x11a   :  { %2021 = vmatprep.subr.mxu1 %v2064_v0  ;;  %2019 = vmatmul.mubr.msk.f32.vlgmr.msra.gmra.mxu1 %vm234_vm2, %v224_v50  ;;  %v199_v57 = vadd.f32 %v198_v55, %v2270_v38 }
 0x11b   :  { %2022 = vmatpush3.msk.msra.mxu1 %vm238_vm1, %v1739_v54  ;;  %v1923_v59 = vpop.f32.mrf.mxu0  ;;  %2025 = vmatprep.mubr.msk.f32.mxu1 %vm2065_vm0, %v2064_v0 }
 0x11c   :  { %2023 = vmatprep.subr.mxu1 %v2064_v0  ;;  %v226_v62 = vmax.f32 %v199_v57, 0.0 }
 0x11d   :  { %2024 = vmatpush3.msra.mxu1 %v1738_v58  ;;  %v203_v61 = vpop.f32.mrf.mxu0 }
 0x11e   :  { %2028 = vmatprep.subr.mxu1 %v2064_v0  ;;  %2026 = vmatmul.mubr.msk.f32.vlgmr.msra.gmra.mxu1 %vm234_vm2, %v225_v56  ;;  %v204_v63 = vadd.f32 %v203_v61, %v2270_v38 }
 0x11f   :  { %2029 = vmatpush3.msk.msra.mxu1 %vm238_vm1, %v1743_v60  ;;  %v1926_v2 = vpop.f32.mrf.mxu0  ;;  %2032 = vmatprep.mubr.msk.f32.mxu1 %vm2065_vm0, %v2064_v0 }
 0x120   :  { %2030 = vmatprep.subr.mxu1 %v2064_v0  ;;  %v227_v5 = vmax.f32 %v204_v63, 0.0 }
 0x121   :  { %2031 = vmatpush3.msra.mxu1 %v1742_v1  ;;  %v208_v4 = vpop.f32.mrf.mxu0  ;;  %v1754_v1 = vld [vmem:[%s2517_s4] ss:$0 sm:$0xff] }
 0x122   :  { %2035 = vmatprep.subr.mxu1 %v2064_v0  ;;  %2033 = vmatmul.mubr.msk.f32.vlgmr.msra.gmra.mxu1 %vm234_vm2, %v226_v62  ;;  %v209_v6 = vadd.f32 %v208_v4, %v2270_v38  ;;  %v1750_v38 = vld [vmem:[%s2514_s3 + $0x100] sm:$0xff] }
 0x123   :  { %2036 = vmatpush3.msk.msra.mxu1 %vm238_vm1, %v1747_v3  ;;  %v1929_v8 = vpop.f32.mrf.mxu0  ;;  %2039 = vmatprep.mubr.msk.f32.mxu1 %vm2065_vm0, %v2064_v0 }
 0x124   :  { %2037 = vmatprep.subr.mxu1 %v2064_v0  ;;  %v228_v10 = vmax.f32 %v209_v6, 0.0  ;;  %v1755_v6 = vld [vmem:[%s2518_s6] ss:$0 sm:$0xff] }
 0x125   :  { %2038 = vmatpush3.msra.mxu1 %v1746_v7 }
 0x126   :  { %2042 = vmatprep.subr.mxu1 %v2064_v0  ;;  %2040 = vmatmul.mubr.msk.f32.vlgmr.msra.gmra.mxu1 %vm234_vm2, %v227_v5 }
 0x127   :  { %2043 = vmatpush3.msk.msra.mxu1 %vm238_vm1, %v1751_v9  ;;  %2046 = vmatprep.mubr.msk.f32.mxu1 %vm2065_vm0, %v2064_v0 }
 0x128   :  { %2044 = vmatprep.subr.mxu1 %v2064_v0 }
 0x129   :  { %2045 = vmatpush3.msra.mxu1 %v1750_v38 }
 0x12a   :  { %2047 = vmatmul.mubr.msk.f32.vlgmr.msra.gmra.mxu1 %vm234_vm2, %v228_v10  ;;  %2049 = vmatprep.subr.mxu1 %v2064_v0 }
 0x12b   :  { %2059 = vmatprep.mubr.msk.f32.mxu1 %vm2065_vm0, %v2064_v0  ;;  %2050 = vmatpush3.msra.mxu1 %v1601_v11 }
 0x12c   :  { %2051 = vmatprep.subr.mxu1 %v2064_v0 }
 0x12d   :  { %2052 = vmatpush3.msra.mxu1 %v1600_v12 }
 0x12e   :  { %2053 = vmatprep.subr.mxu1 %v2064_v0 }
 0x12f   :  { %2054 = vmatpush3.msra.mxu1 %v1599_v13 }
 0x130   :  { %2055 = vmatprep.subr.mxu1 %v2064_v0 }
 0x131   :  { %2056 = vmatpush3.msra.mxu1 %v1598_v14 }
 0x132   :  { %2057 = vmatprep.subr.mxu1 %v2064_v0 }
 0x133   :  { %2058 = vmatpush3.msra.mxu1 %v1597_v15 }
 0x1aa   :  { %v308_v16 = vpop.f32.mrf.mxu1 }
 0x1ac   :  { %v1936_v17 = vpop.f32.mrf.mxu1 }
 0x1ae   :  { %v384_v18 = vpop.f32.mrf.mxu1 }
 0x1af   :  { %v385_v33 = vadd.f32 %v384_v18, %v308_v16 }
 0x1b0   :  { %v1943_v19 = vpop.f32.mrf.mxu1 }
 0x1b2   :  { %v463_v20 = vpop.f32.mrf.mxu1 }
 0x1b3   :  { %v467_v35 = vadd.f32 %v463_v20, %v385_v33 }
 0x1b4   :  { %v1950_v21 = vpop.f32.mrf.mxu1 }
 0x1b6   :  { %v543_v22 = vpop.f32.mrf.mxu1 }
 0x1b7   :  { %v547_v37 = vadd.f32 %v543_v22, %v467_v35 }
 0x1b8   :  { %v1957_v23 = vpop.f32.mrf.mxu1 }
 0x1ba   :  { %v623_v24 = vpop.f32.mrf.mxu1 }
 0x1bb   :  { %v627_v40 = vadd.f32 %v623_v24, %v547_v37 }
 0x1bc   :  { %v1964_v25 = vpop.f32.mrf.mxu1 }
 0x1be   :  { %v703_v26 = vpop.f32.mrf.mxu1 }
 0x1bf   :  { %v707_v42 = vadd.f32 %v703_v26, %v627_v40 }
 0x1c0   :  { %v1971_v27 = vpop.f32.mrf.mxu1 }
 0x1c2   :  { %v783_v28 = vpop.f32.mrf.mxu1 }
 0x1c3   :  { %v787_v44 = vadd.f32 %v783_v28, %v707_v42 }
 0x1c4   :  { %v1978_v29 = vpop.f32.mrf.mxu1 }
 0x1c6   :  { %v863_v0 = vpop.f32.mrf.mxu1 }
 0x1c7   :  { %v867_v46 = vadd.f32 %v863_v0, %v787_v44 }
 0x1c8   :  { %v1985_v30 = vpop.f32.mrf.mxu1 }
 0x1ca   :  { %v943_v31 = vpop.f32.mrf.mxu1 }
 0x1cb   :  { %v947_v48 = vadd.f32 %v943_v31, %v867_v46 }
 0x1cc   :  { %v1992_v32 = vpop.f32.mrf.mxu1 }
 0x1ce   :  { %v1023_v34 = vpop.f32.mrf.mxu1 }
 0x1cf   :  { %v1027_v50 = vadd.f32 %v1023_v34, %v947_v48 }
 0x1d0   :  { %v1999_v36 = vpop.f32.mrf.mxu1 }
 0x1d2   :  { %v1103_v39 = vpop.f32.mrf.mxu1 }
 0x1d3   :  { %v1107_v52 = vadd.f32 %v1103_v39, %v1027_v50 }
 0x1d4   :  { %v2006_v41 = vpop.f32.mrf.mxu1 }
 0x1d6   :  { %v1183_v43 = vpop.f32.mrf.mxu1 }
 0x1d7   :  { %v1187_v54 = vadd.f32 %v1183_v43, %v1107_v52 }
 0x1d8   :  { %v2013_v45 = vpop.f32.mrf.mxu1 }
 0x1da   :  { %v1263_v47 = vpop.f32.mrf.mxu1 }
 0x1db   :  { %v1267_v56 = vadd.f32 %v1263_v47, %v1187_v54 }
 0x1dc   :  { %v2020_v49 = vpop.f32.mrf.mxu1 }
 0x1de   :  { %v1343_v51 = vpop.f32.mrf.mxu1 }
 0x1df   :  { %v1347_v58 = vadd.f32 %v1343_v51, %v1267_v56 }
 0x1e0   :  { %v2027_v53 = vpop.f32.mrf.mxu1 }
 0x1e2   :  { %v1423_v55 = vpop.f32.mrf.mxu1 }
 0x1e3   :  { %v1427_v60 = vadd.f32 %v1423_v55, %v1347_v58 }
 0x1e4   :  { %v2034_v57 = vpop.f32.mrf.mxu1 }
 0x1e6   :  { %v1503_v59 = vpop.f32.mrf.mxu1 }
 0x1e7   :  { %v1507_v62 = vadd.f32 %v1503_v59, %v1427_v60 }
 0x1e8   :  { %v2041_v61 = vpop.f32.mrf.mxu1 }
 0x1ea   :  { %v1583_v63 = vpop.f32.mrf.mxu1 }
 0x1eb   :  { %v1587_v2 = vadd.f32 %v1583_v63, %v1507_v62 }
 0x1ec   :  { %v2048_v3 = vpop.f32.mrf.mxu1 }
 0x1ed   :  { %v1595_v4 = vadd.f32 %v1754_v1, %v1587_v2 }
 0x1ef   :  { %v1596_v5 = vmax.f32 %v1595_v4, 0.0 }
 0x1f1   :  { %2060 = vmatmul.mubr.msk.f32.vlgmr.msra.gmra.mxu1 %vm1609_vm3, %v1596_v5 }
 0x2b1   :  { %v1679_v7 = vpop.f32.mrf.mxu1 }
 0x2b2   :  { %v1680_v8 = vadd.f32 %v1755_v6, %v1679_v7 }
 0x2b3   :  { %v2061_v9 = vpop.f32.mrf.mxu1 }
 0x2b4   :  { %1683 = vst [vmem:[%s2519_s7] sm:$0xff] %v1680_v8 }

</bundles_post_ra>
